<compile_context>
chip_gen: v7x
topology: tpu7x:2x2x1
jax: 0.10.0
libtpu: 0.0.40
codegen_flags: <defaults>
</compile_context>

<pallas_src>
import functools

import numpy as np
import jax
import jax.numpy as jnp
from jax.experimental import pallas as pl
from jax.experimental.pallas import tpu as pltpu


def _round_up(a, b):
    return (a + b - 1) // b * b


def random_mask_kernel(x_ref, o_ref, *, seed):
    tm, d = o_ref.shape
    i = pl.program_id(0)

    # Global element index (counter) for this tile.  int32 wrap-around for
    # huge arrays only reorders the hash inputs; randomness is unaffected.
    rows = jax.lax.broadcasted_iota(jnp.int32, (tm, d), 0) + i * tm
    cols = jax.lax.broadcasted_iota(jnp.int32, (tm, d), 1)
    ctr = (rows * d + cols).astype(jnp.uint32)

    # murmur3 fmix32 of (counter + seed): full-avalanche uniform bits.
    h = ctr + jnp.uint32(seed & 0xFFFFFFFF)
    h = h ^ (h >> 16)
    h = h * jnp.uint32(0x85EBCA6B)
    h = h ^ (h >> 13)
    h = h * jnp.uint32(0xC2B2AE35)
    h = h ^ (h >> 16)

    # Top 24 bits -> uniform float32 in [0, 1).  (Cast via int32 so only a
    # signed int->float convert is needed.)
    u = (h >> 8).astype(jnp.int32).astype(jnp.float32) * jnp.float32(1.0 / (1 << 24))

    # out = 0 * x + threshs  (keeps the reference's NaN/Inf propagation).
    o_ref[...] = 0.0 * x_ref[...] + u


def random_mask(x, seed=0):
    """Pallas implementation of RandomMask.forward(x)."""
    orig_shape = x.shape
    d = int(orig_shape[-1])
    n = int(np.prod(orig_shape[:-1]))

    x2 = x.reshape(n, d).astype(jnp.float32)

    # Lane-dense last dim; sublane-aligned rows.
    d_pad = _round_up(d, 128)
    # Row tile: <= ~2 MiB per buffer, multiple of 8, capped at 1024 rows.
    tm_cap = max(8, min(1024, ((2 << 20) // (4 * d_pad)) // 8 * 8))
    tm = min(tm_cap, _round_up(n, 8))
    n_pad = _round_up(n, tm)

    if (n_pad, d_pad) != (n, d):
        x2 = jnp.pad(x2, ((0, n_pad - n), (0, d_pad - d)))

    kernel = functools.partial(random_mask_kernel, seed=int(seed))

    compiler_params = None
    if jax.default_backend() == "tpu":
        # Row tiles are independent (hash RNG is grid-invariant) -> megacore.
        compiler_params = pltpu.CompilerParams(dimension_semantics=("parallel",))

    out = pl.pallas_call(
        kernel,
        out_shape=jax.ShapeDtypeStruct((n_pad, d_pad), jnp.float32),
        grid=(n_pad // tm,),
        in_specs=[pl.BlockSpec((tm, d_pad), lambda i: (i, 0))],
        out_specs=pl.BlockSpec((tm, d_pad), lambda i: (i, 0)),
        compiler_params=compiler_params,
    )(x2)

    return out[:n, :d].reshape(orig_shape)


if __name__ == "__main__":
    key = jax.random.PRNGKey(0)

    # x = (batch, seq, input_size) as used in loupe_sampler.py
    batch, seq, input_size = 2, 8, 128
    x = jax.random.normal(key, (batch, seq, input_size), dtype=jnp.float32)

    out = jax.block_until_ready(random_mask(x, seed=1234))

    assert out.shape == x.shape and out.dtype == jnp.float32
    o = np.asarray(out)
    # x is finite everywhere -> out == threshs ~ U[0, 1)
    assert np.all(o >= 0.0) and np.all(o < 1.0)
    assert 0.4 < float(o.mean()) < 0.6

    # Non-lane-aligned shape exercises the padding / tiling path.
    x2 = jax.random.normal(jax.random.PRNGKey(1), (3, 4, 100), dtype=jnp.float32)
    out2 = jax.block_until_ready(random_mask(x2, seed=7))
    o2 = np.asarray(out2)
    assert out2.shape == x2.shape
    assert np.all(o2 >= 0.0) and np.all(o2 < 1.0)

    print("KERNEL_OK")
</pallas_src>

<mosaic_0001>
module attributes {stable_mosaic.version = 11 : i64} {
  func.func @random_mask_kernel(%arg0: i32, %arg1: memref<16x128xf32, #tpu.memory_space<vmem>>, %arg2: memref<16x128xf32, #tpu.memory_space<vmem>>) attributes {dimension_semantics = [#tpu.dimension_semantics<arbitrary>], iteration_bounds = array<i64: 1>, scalar_prefetch = 0 : i64, scratch_operands = 0 : i64, tpu.core_type = #tpu.core_type<tc>, window_params = [{transform_indices = @transform_0, window_bounds = array<i64: 16, 128>}, {transform_indices = @transform_1, window_bounds = array<i64: 16, 128>}]} {
    %0 = tpu.iota {dimensions = array<i32: 0>} : vector<16x128xi32>
    %c16_i32 = arith.constant 16 : i32
    %1 = arith.muli %arg0, %c16_i32 : i32
    %2 = vector.broadcast %1 : i32 to vector<16x128xi32>
    %3 = arith.addi %0, %2 : vector<16x128xi32>
    %4 = tpu.iota {dimensions = array<i32: 1>} : vector<16x128xi32>
    %c128_i32 = arith.constant 128 : i32
    %5 = vector.broadcast %c128_i32 : i32 to vector<16x128xi32>
    %6 = arith.muli %3, %5 : vector<16x128xi32>
    %7 = arith.addi %6, %4 : vector<16x128xi32>
    %c1234_i32 = arith.constant 1234 : i32
    %8 = vector.broadcast %c1234_i32 : i32 to vector<16x128xi32>
    %9 = arith.addi %7, %8 : vector<16x128xi32>
    %c16_i32_0 = arith.constant 16 : i32
    %10 = vector.broadcast %c16_i32_0 : i32 to vector<16x128xi32>
    %11 = arith.shrui %9, %10 : vector<16x128xi32>
    %12 = arith.xori %9, %11 : vector<16x128xi32>
    %c-2048144789_i32 = arith.constant -2048144789 : i32
    %13 = vector.broadcast %c-2048144789_i32 : i32 to vector<16x128xi32>
    %14 = arith.muli %12, %13 : vector<16x128xi32>
    %c13_i32 = arith.constant 13 : i32
    %15 = vector.broadcast %c13_i32 : i32 to vector<16x128xi32>
    %16 = arith.shrui %14, %15 : vector<16x128xi32>
    %17 = arith.xori %14, %16 : vector<16x128xi32>
    %c-1028477387_i32 = arith.constant -1028477387 : i32
    %18 = vector.broadcast %c-1028477387_i32 : i32 to vector<16x128xi32>
    %19 = arith.muli %17, %18 : vector<16x128xi32>
    %c16_i32_1 = arith.constant 16 : i32
    %20 = vector.broadcast %c16_i32_1 : i32 to vector<16x128xi32>
    %21 = arith.shrui %19, %20 : vector<16x128xi32>
    %22 = arith.xori %19, %21 : vector<16x128xi32>
    %c8_i32 = arith.constant 8 : i32
    %23 = vector.broadcast %c8_i32 : i32 to vector<16x128xi32>
    %24 = arith.shrui %22, %23 : vector<16x128xi32>
    %25 = arith.sitofp %24 : vector<16x128xi32> to vector<16x128xf32>
    %cst = arith.constant 5.96046448E-8 : f32
    %26 = vector.broadcast %cst : f32 to vector<16x128xf32>
    %27 = arith.mulf %25, %26 : vector<16x128xf32>
    %c0 = arith.constant 0 : index
    %c0_2 = arith.constant 0 : index
    %28 = vector.load %arg1[%c0, %c0_2] : memref<16x128xf32, #tpu.memory_space<vmem>>, vector<16x128xf32>
    %cst_3 = arith.constant 0.000000e+00 : f32
    %29 = vector.broadcast %cst_3 : f32 to vector<16x128xf32>
    %30 = arith.mulf %29, %28 : vector<16x128xf32>
    %31 = arith.addf %30, %27 : vector<16x128xf32>
    %c0_4 = arith.constant 0 : index
    %c0_5 = arith.constant 0 : index
    %32 = vector.load %arg2[%c0_4, %c0_5] : memref<16x128xf32, #tpu.memory_space<vmem>>, vector<16x128xf32>
    tpu.vector_store %arg2[%c0_4, %c0_5], %31 {strides = array<i32>} : memref<16x128xf32, #tpu.memory_space<vmem>>, vector<16x128xf32>,
    return
  }
  func.func @transform_0(%arg0: i32) -> (i32, i32) {
    %c0_i32 = arith.constant 0 : i32
    %c0_i32_0 = arith.constant 0 : i32
    return %arg0, %c0_i32 : i32, i32
  }
  func.func @transform_1(%arg0: i32) -> (i32, i32) {
    %c0_i32 = arith.constant 0 : i32
    %c0_i32_0 = arith.constant 0 : i32
    return %arg0, %c0_i32 : i32, i32
  }
}

</mosaic_0001>

<bundles_post_ra>
// kernel: tpu_custom_call.1
= control target key start
LH: loop header
LB: loop body
LE: loop exit
PB: predicated region body
PF: predicated region fallthrough
CT: control target
= control target key end

     0   :  { %6 = vsyncpa [#allocation3], 0  ;;  %s181_s0 = inlined_call_operand.hbm [shape: f32[16,128], index: 0, kind: input, shape index: {}]   ;;  %s182_s1 = inlined_call_operand.hbm [shape: f32[16,128], index: 1, kind: output, shape index: {}]  }
   0x1   :  { %7 = vsyncpa [#allocation4], 0  ;;  %s137_s6 = smov [#allocation2]   ;;  %s89_s10 = scalar_lea.hbm %s181_s0, 256 }
   0x2   :  { %s13_s7 = sshll.u32 %s137_s6, 4  ;;  %p90_p0 = scmp.ne.s32.totalorder %s181_s0, %s89_s10  ;;  %s14_s7 = int_to_ptr.vmem [resolvable:$true] %s13_s7 }
   0x3   :  { %p93_p1 = scmp.lt.u32.totalorder %s89_s10, %s181_s0 }
   0x5   :  { %p95_p2 = pnand %p93_p1, %p90_p0 }
   0x7   :  { %98 = shalt.err (!%p95_p2)
}
   0x8   :  { %s99_s15 = scalar_lea.vmem %s14_s7, 256  ;;  %p104_p4 = scmp.lt.s32.totalorder %s14_s7, %s14_s7 }
   0x9   :  { %p100_p3 = scmp.ne.s32.totalorder %s14_s7, %s99_s15  ;;  %p105_p5 = scmp.lt.s32.totalorder %s99_s15, %s99_s15 }
   0xb   :  { %p106_p6 = por %p105_p5, %p104_p4 }
   0xd   :  { %p107_p7 = pnand %p106_p6, %p100_p3 }
   0xf   :  { %110 = shalt.err (!%p107_p7)
}
  0x10   :  { %s138_s16 = smov 128   ;;  %s139_s17 = smov 8  }
  0x11   :  { %19 = dma.hbm_to_vmem [thread:$0]  %s181_s0, 256, %s14_s7, [#allocation3], %s138_s16, %s138_s16, %s139_s17  }
  0x12   :  { %133 = dma.done.wait [#allocation3], 256  }
  0x13   :  { %134 = vsyncadd [#allocation3], 4294967040  ;;  %v23_v0 = vlaneseq  ;;  %v60_v25 = vld [vmem:[#allocation2] sm:$0xff]  ;;  %v61_v28 = vld [vmem:[#allocation2 + $0x8] sm:$0xff]  ;;  %s140_s0 = smov [#allocation5]  }
  0x14   :  { %v62_v30 = vmul.f32 0.0, %v60_v25  ;;  %v63_v34 = vmul.f32 0.0, %v61_v28  ;;  %s73_s20 = sshll.u32 %s140_s0, 4  ;;  %s74_s20 = int_to_ptr.vmem [resolvable:$true] %s73_s20 }
  0x15   :  { %v24_v1 = vshrl.u32 %v23_v0, 7  ;;  %v31_v2 = vand.u32 127, %v23_v0  ;;  %s111_s21 = scalar_lea.vmem %s74_s20, 256  ;;  %p116_p9 = scmp.lt.s32.totalorder %s74_s20, %s74_s20 }
  0x16   :  { %p112_p8 = scmp.ne.s32.totalorder %s74_s20, %s111_s21  ;;  %p117_p10 = scmp.lt.s32.totalorder %s111_s21, %s111_s21 }
  0x17   :  { %v32_v3 = vmul.u32 128, %v24_v1  ;;  %v25_v4 = vadd.s32 8, %v24_v1 }
  0x18   :  { %p118_p11 = por %p117_p10, %p116_p9 }
  0x19   :  { %v34_v5 = vadd.s32 %v32_v3, %v31_v2  ;;  %v33_v6 = vmul.u32 128, %v25_v4 }
  0x1a   :  { %p119_p12 = pnand %p118_p11, %p112_p8 }
  0x1b   :  { %v36_v7 = vadd.s32 1234, %v34_v5  ;;  %v35_v8 = vadd.s32 %v33_v6, %v31_v2 }
  0x1d   :  { %v38_v9 = vshrl.u32 %v36_v7, 16  ;;  %v37_v10 = vadd.s32 1234, %v35_v8 }
  0x1f   :  { %v40_v11 = vxor.u32 %v38_v9, %v36_v7  ;;  %v39_v12 = vshrl.u32 %v37_v10, 16 }
  0x21   :  { %v42_v13 = vmul.u32 2246822507, %v40_v11  ;;  %v41_v14 = vxor.u32 %v39_v12, %v37_v10 }
  0x23   :  { %v44_v15 = vshrl.u32 %v42_v13, 13  ;;  %v43_v16 = vmul.u32 2246822507, %v41_v14 }
  0x25   :  { %v46_v17 = vxor.u32 %v44_v15, %v42_v13  ;;  %v45_v18 = vshrl.u32 %v43_v16, 13 }
  0x27   :  { %v48_v19 = vmul.u32 3266489909, %v46_v17  ;;  %v47_v20 = vxor.u32 %v45_v18, %v43_v16 }
  0x29   :  { %v50_v21 = vshrl.u32 %v48_v19, 16  ;;  %v49_v22 = vmul.u32 3266489909, %v47_v20 }
  0x2b   :  { %v52_v23 = vxor.u32 %v50_v21, %v48_v19  ;;  %v51_v24 = vshrl.u32 %v49_v22, 16 }
  0x2d   :  { %v54_v26 = vshrl.u32 %v52_v23, 8  ;;  %v53_v27 = vxor.u32 %v51_v24, %v49_v22 }
  0x2f   :  { %v56_v29 = vcvt.s32.f32 %v54_v26  ;;  %v55_v31 = vshrl.u32 %v53_v27, 8 }
  0x31   :  { %v58_v32 = vmul.f32 5.9604645e-08, %v56_v29  ;;  %v57_v33 = vcvt.s32.f32 %v55_v31 }
  0x33   :  { %v64_v35 = vadd.f32 %v62_v30, %v58_v32  ;;  %v59_v36 = vmul.f32 5.9604645e-08, %v57_v33 }
  0x35   :  { %66 = vst [vmem:[#allocation5] sm:$0xff] %v64_v35  ;;  %v65_v37 = vadd.f32 %v63_v34, %v59_v36 }
  0x37   :  { %67 = vst [vmem:[#allocation5 + $0x8] sm:$0xff] %v65_v37 }
  0x38   :  { %122 = shalt.err (!%p119_p12)
}
  0x39   :  { %s123_s24 = scalar_lea.hbm %s182_s1, 256 }
  0x3a   :  { %p124_p13 = scmp.ne.s32.totalorder %s182_s1, %s123_s24  ;;  %p127_p0 = scmp.lt.u32.totalorder %s123_s24, %s182_s1 }
  0x3c   :  { %p129_p1 = pnand %p127_p0, %p124_p13 }
  0x3e   :  { %132 = shalt.err (!%p129_p1)
}
  0x3f   :  { %79 = dma.vmem_to_hbm [thread:$0]  %s74_s20, 256, %s182_s1, [#allocation4], %s138_s16, %s138_s16, %s139_s17  }
  0x40   :  { %135 = dma.done.wait [#allocation4], 256  }
  0x41   :  { %136 = vsyncadd [#allocation4], 4294967040 }
  0x42   :  { %83 = vsyncpa [#allocation3], 1 }
  0x43   :  { %84 = vsyncpa [#allocation4], 1 }

</bundles_post_ra>
